<compile_context>
chip_gen: v6e
topology: v6e:2x2x1
jax: 0.10.0
libtpu: 0.0.40
codegen_flags: <defaults>
</compile_context>

<pallas_src>
import functools

import jax
import jax.numpy as jnp
from jax.experimental import pallas as pl
from jax.experimental.pallas import tpu as pltpu

LANES = 128
SUBLANES = 8
ALIGN = SUBLANES * LANES        # 1024 elems: keeps `rows` a multiple of 8
MAX_TILE_ROWS = 8192            # 8192*128*4 B = 4 MiB per f32 input tile
NUM_CHUNKS = 2                  # leading "parallel" grid axis (2 TCs on v7x)


def _l1_loss_kernel(est_ref, gt_ref, mask_ref, num_ref, den_ref, *,
                    tile_rows, tiles_per_chunk, valid_rows, k_split, m_per,
                    needs_mask):
    c = pl.program_id(0)   # chunk ("parallel")
    j = pl.program_id(1)   # step within chunk ("arbitrary", revisits outputs)

    @pl.when(j == 0)
    def _():
        num_ref[...] = jnp.zeros_like(num_ref)
        den_ref[...] = jnp.zeros_like(den_ref)

    est = est_ref[...].astype(jnp.float32)
    gt = gt_ref[...].astype(jnp.float32)
    m = mask_ref[...].astype(jnp.float32)
    masked_abs = m * jnp.abs(est - gt)

    def accumulate(num_vals, den_vals):
        # (tile_rows, 128) -> (K, M, 8, 128): the trailing (8, 128) stays
        # vreg-aligned so the reshape is free.  sum(axis=1) gives K
        # independent add chains (ILP) feeding small lane-dense accumulators
        # that live in the resident output blocks.
        num_ref[...] += num_vals.reshape(
            k_split, m_per, SUBLANES, LANES).sum(axis=1)[None]
        den_ref[...] += den_vals.reshape(
            k_split, m_per, SUBLANES, LANES).sum(axis=1)[None]

    if needs_mask:
        # Only edge tiles (partial last tile / clamped out-of-range tiles from
        # the chunk split) pay for the masking; full tiles take the cheap path.
        t = c * tiles_per_chunk + j                       # unclamped tile idx
        fully_valid = (t + 1) * tile_rows <= valid_rows

        @pl.when(fully_valid)
        def _():
            accumulate(masked_abs, m)

        @pl.when(jnp.logical_not(fully_valid))
        def _():
            local = jax.lax.broadcasted_iota(jnp.int32, (tile_rows, LANES), 0)
            valid = (t * tile_rows + local) < valid_rows
            # Select (not multiply): out-of-bounds DMA region is
            # uninitialized VMEM and may contain NaN/Inf garbage.
            accumulate(jnp.where(valid, masked_abs, 0.0),
                       jnp.where(valid, m, 0.0))
    else:
        accumulate(masked_abs, m)


def l1_loss(depth_est, depth_gt, mask, *, max_tile_rows=MAX_TILE_ROWS):
    """Masked L1 loss, matching the PyTorch reference semantics."""
    assert depth_est.shape == depth_gt.shape == mask.shape
    assert max_tile_rows % SUBLANES == 0

    flat_est = depth_est.reshape(-1)
    flat_gt = depth_gt.reshape(-1)
    flat_mask = mask.reshape(-1)
    if flat_mask.dtype == jnp.bool_:
        flat_mask = flat_mask.astype(jnp.uint8)   # keep the mask narrow
    n = flat_est.shape[0]

    # 1024-aligned prefix goes through the kernel; the tail stays in JAX.
    n_main = (n // ALIGN) * ALIGN
    rows = n_main // LANES

    num = jnp.float32(0.0)
    den = jnp.float32(0.0)

    if rows > 0:
        if n_main == n:
            # Pure view: no HBM copy.
            est2d = flat_est.reshape(rows, LANES)
            gt2d = flat_gt.reshape(rows, LANES)
            mask2d = flat_mask.reshape(rows, LANES)
        else:
            # Prefix slice (may materialize a copy in XLA, but never the old
            # full jnp.pad of all three inputs; tail handled below in JAX).
            est2d = flat_est[:n_main].reshape(rows, LANES)
            gt2d = flat_gt[:n_main].reshape(rows, LANES)
            mask2d = flat_mask[:n_main].reshape(rows, LANES)

        tile_rows = max_tile_rows if rows >= max_tile_rows else rows
        total_tiles = pl.cdiv(rows, tile_rows)
        num_chunks = NUM_CHUNKS if total_tiles >= 2 else 1
        tiles_per_chunk = pl.cdiv(total_tiles, num_chunks)
        needs_mask = (rows % tile_rows != 0) or (
            num_chunks * tiles_per_chunk > total_tiles)

        # K independent (8,128) partial accumulators per chunk.
        n_vregs = tile_rows // SUBLANES
        k_split = 1
        for cand in (8, 4, 2):
            if n_vregs % cand == 0:
                k_split = cand
                break
        m_per = n_vregs // k_split

        def in_index(c, j):
            # Clamp so the (at most num_chunks-1) overflow steps of the last
            # chunk re-read the final tile; their contribution is masked to 0.
            t = jnp.minimum(c * tiles_per_chunk + j, total_tiles - 1)
            return (t, 0)

        def out_index(c, j):
            return (c, 0, 0, 0)

        tile_spec = pl.BlockSpec((tile_rows, LANES), in_index)
        acc_spec = pl.BlockSpec((1, k_split, SUBLANES, LANES), out_index)
        acc_shape = jax.ShapeDtypeStruct(
            (num_chunks, k_split, SUBLANES, LANES), jnp.float32)

        # Explicit VMEM budget: double-buffered input tiles + small outputs
        # + headroom, capped at the v7x scoped default.
        in_bytes = sum(2 * tile_rows * LANES * x.dtype.itemsize
                       for x in (est2d, gt2d, mask2d))
        vmem_limit = int(min(32 << 20, max(16 << 20, in_bytes + (6 << 20))))

        kernel = functools.partial(
            _l1_loss_kernel,
            tile_rows=tile_rows,
            tiles_per_chunk=tiles_per_chunk,
            valid_rows=rows,
            k_split=k_split,
            m_per=m_per,
            needs_mask=needs_mask,
        )

        num_part, den_part = pl.pallas_call(
            kernel,
            out_shape=(acc_shape, acc_shape),
            grid_spec=pltpu.PrefetchScalarGridSpec(
                num_scalar_prefetch=0,
                grid=(num_chunks, tiles_per_chunk),
                in_specs=[tile_spec, tile_spec, tile_spec],
                out_specs=(acc_spec, acc_spec),
            ),
            compiler_params=pltpu.CompilerParams(
                dimension_semantics=("parallel", "arbitrary"),
                vmem_limit_bytes=vmem_limit,
            ),
        )(est2d, gt2d, mask2d)

        num = num + jnp.sum(num_part)
        den = den + jnp.sum(den_part)

    if n_main != n:
        # <=1023-element tail: trivially cheap in plain JAX.
        est_t = flat_est[n_main:].astype(jnp.float32)
        gt_t = flat_gt[n_main:].astype(jnp.float32)
        m_t = flat_mask[n_main:].astype(jnp.float32)
        num = num + jnp.sum(m_t * jnp.abs(est_t - gt_t))
        den = den + jnp.sum(m_t)

    # No epsilon: all-zero mask -> NaN/Inf, same as the PyTorch reference.
    return num / den


if __name__ == "__main__":
    key = jax.random.PRNGKey(0)
    k1, k2, k3 = jax.random.split(key, 3)

    def ref_loss(e, g, m):
        return jnp.sum(m * jnp.abs(e - g)) / jnp.sum(m)

    # Small NCHW-like depth maps: batch=2, channels=4, spatial=16x16.
    shape = (2, 4, 16, 16)
    depth_est = jax.random.uniform(k1, shape, dtype=jnp.float32) * 10.0
    depth_gt = jax.random.uniform(k2, shape, dtype=jnp.float32) * 10.0
    mask = (jax.random.uniform(k3, shape, dtype=jnp.float32) > 0.5).astype(
        jnp.float32)

    loss = jax.block_until_ready(l1_loss(depth_est, depth_gt, mask))
    ref = ref_loss(depth_est, depth_gt, mask)
    assert jnp.allclose(loss, ref, rtol=1e-5, atol=1e-5), (loss, ref)

    # Tiny extra checks exercising the multi-tile / 2-chunk, partial-tile and
    # JAX-tail paths (tile cap overridden so the masked branches actually run).
    shape2 = (3, 8, 128)   # rows=24
    e2 = jax.random.normal(k1, shape2, dtype=jnp.float32)
    g2 = jax.random.normal(k2, shape2, dtype=jnp.float32)
    m2 = (jax.random.uniform(k3, shape2) > 0.3).astype(jnp.float32)

    out2 = jax.block_until_ready(l1_loss(e2, g2, m2, max_tile_rows=8))
    assert jnp.allclose(out2, ref_loss(e2, g2, m2), rtol=1e-5, atol=1e-5)

    out3 = jax.block_until_ready(l1_loss(e2, g2, m2, max_tile_rows=16))
    assert jnp.allclose(out3, ref_loss(e2, g2, m2), rtol=1e-5, atol=1e-5)

    shape4 = (5, 300)      # 1500 elems: 1024-aligned prefix + 476-elem tail
    e4 = jax.random.normal(k1, shape4, dtype=jnp.float32)
    g4 = jax.random.normal(k2, shape4, dtype=jnp.float32)
    m4 = (jax.random.uniform(k3, shape4) > 0.5).astype(jnp.float32)
    out4 = jax.block_until_ready(l1_loss(e4, g4, m4))
    assert jnp.allclose(out4, ref_loss(e4, g4, m4), rtol=1e-5, atol=1e-5)

    print("KERNEL_OK")
</pallas_src>

<mosaic_0001>
module attributes {stable_mosaic.version = 11 : i64} {
  func.func @_l1_loss_kernel(%arg0: i32, %arg1: i32, %arg2: memref<16x128xf32, #tpu.memory_space<vmem>>, %arg3: memref<16x128xf32, #tpu.memory_space<vmem>>, %arg4: memref<16x128xf32, #tpu.memory_space<vmem>>, %arg5: memref<1x2x8x128xf32, #tpu.memory_space<vmem>>, %arg6: memref<1x2x8x128xf32, #tpu.memory_space<vmem>>) attributes {dimension_semantics = [#tpu.dimension_semantics<parallel>, #tpu.dimension_semantics<arbitrary>], iteration_bounds = array<i64: 1, 1>, scalar_prefetch = 0 : i64, scratch_operands = 0 : i64, tpu.core_type = #tpu.core_type<tc>, window_params = [{transform_indices = @transform_0, window_bounds = array<i64: 16, 128>}, {transform_indices = @transform_1, window_bounds = array<i64: 16, 128>}, {transform_indices = @transform_2, window_bounds = array<i64: 16, 128>}, {transform_indices = @transform_3, window_bounds = array<i64: 1, 2, 8, 128>}, {transform_indices = @transform_4, window_bounds = array<i64: 1, 2, 8, 128>}]} {
    %c0_i32 = arith.constant 0 : i32
    %0 = arith.cmpi eq, %arg1, %c0_i32 : i32
    %1 = arith.extui %0 : i1 to i32
    %c0_i32_0 = arith.constant 0 : i32
    %2 = arith.cmpi ne, %1, %c0_i32_0 : i32
    scf.if %2 {
      %cst_23 = arith.constant 0.000000e+00 : f32
      %21 = vector.broadcast %cst_23 : f32 to vector<1x2x8x128xf32>
      %c0_24 = arith.constant 0 : index
      %c0_25 = arith.constant 0 : index
      %c0_26 = arith.constant 0 : index
      %c0_27 = arith.constant 0 : index
      %22 = vector.load %arg5[%c0_24, %c0_25, %c0_26, %c0_27] : memref<1x2x8x128xf32, #tpu.memory_space<vmem>>, vector<1x2x8x128xf32>
      tpu.vector_store %arg5[%c0_24, %c0_25, %c0_26, %c0_27], %21 {strides = array<i32>} : memref<1x2x8x128xf32, #tpu.memory_space<vmem>>, vector<1x2x8x128xf32>,
      %cst_28 = arith.constant 0.000000e+00 : f32
      %23 = vector.broadcast %cst_28 : f32 to vector<1x2x8x128xf32>
      %c0_29 = arith.constant 0 : index
      %c0_30 = arith.constant 0 : index
      %c0_31 = arith.constant 0 : index
      %c0_32 = arith.constant 0 : index
      %24 = vector.load %arg6[%c0_29, %c0_30, %c0_31, %c0_32] : memref<1x2x8x128xf32, #tpu.memory_space<vmem>>, vector<1x2x8x128xf32>
      tpu.vector_store %arg6[%c0_29, %c0_30, %c0_31, %c0_32], %23 {strides = array<i32>} : memref<1x2x8x128xf32, #tpu.memory_space<vmem>>, vector<1x2x8x128xf32>,
    } else {
    }
    %c0 = arith.constant 0 : index
    %c0_1 = arith.constant 0 : index
    %3 = vector.load %arg2[%c0, %c0_1] : memref<16x128xf32, #tpu.memory_space<vmem>>, vector<16x128xf32>
    %c0_2 = arith.constant 0 : index
    %c0_3 = arith.constant 0 : index
    %4 = vector.load %arg3[%c0_2, %c0_3] : memref<16x128xf32, #tpu.memory_space<vmem>>, vector<16x128xf32>
    %c0_4 = arith.constant 0 : index
    %c0_5 = arith.constant 0 : index
    %5 = vector.load %arg4[%c0_4, %c0_5] : memref<16x128xf32, #tpu.memory_space<vmem>>, vector<16x128xf32>
    %6 = arith.subf %3, %4 : vector<16x128xf32>
    %7 = math.absf %6 : vector<16x128xf32>
    %8 = arith.mulf %5, %7 : vector<16x128xf32>
    %c0_6 = arith.constant 0 : index
    %c0_7 = arith.constant 0 : index
    %c0_8 = arith.constant 0 : index
    %c0_9 = arith.constant 0 : index
    %9 = vector.load %arg5[%c0_6, %c0_7, %c0_8, %c0_9] : memref<1x2x8x128xf32, #tpu.memory_space<vmem>>, vector<1x2x8x128xf32>
    %10 = vector.shape_cast %8 : vector<16x128xf32> to vector<2x1x8x128xf32>
    %cst = arith.constant dense<0.000000e+00> : vector<2x8x128xf32>
    %11 = vector.multi_reduction <add>, %10, %cst [1] : vector<2x1x8x128xf32> to vector<2x8x128xf32>
    %12 = vector.shape_cast %11 : vector<2x8x128xf32> to vector<1x2x8x128xf32>
    %13 = arith.addf %9, %12 : vector<1x2x8x128xf32>
    %c0_10 = arith.constant 0 : index
    %c0_11 = arith.constant 0 : index
    %c0_12 = arith.constant 0 : index
    %c0_13 = arith.constant 0 : index
    %14 = vector.load %arg5[%c0_10, %c0_11, %c0_12, %c0_13] : memref<1x2x8x128xf32, #tpu.memory_space<vmem>>, vector<1x2x8x128xf32>
    tpu.vector_store %arg5[%c0_10, %c0_11, %c0_12, %c0_13], %13 {strides = array<i32>} : memref<1x2x8x128xf32, #tpu.memory_space<vmem>>, vector<1x2x8x128xf32>,
    %c0_14 = arith.constant 0 : index
    %c0_15 = arith.constant 0 : index
    %c0_16 = arith.constant 0 : index
    %c0_17 = arith.constant 0 : index
    %15 = vector.load %arg6[%c0_14, %c0_15, %c0_16, %c0_17] : memref<1x2x8x128xf32, #tpu.memory_space<vmem>>, vector<1x2x8x128xf32>
    %16 = vector.shape_cast %5 : vector<16x128xf32> to vector<2x1x8x128xf32>
    %cst_18 = arith.constant dense<0.000000e+00> : vector<2x8x128xf32>
    %17 = vector.multi_reduction <add>, %16, %cst_18 [1] : vector<2x1x8x128xf32> to vector<2x8x128xf32>
    %18 = vector.shape_cast %17 : vector<2x8x128xf32> to vector<1x2x8x128xf32>
    %19 = arith.addf %15, %18 : vector<1x2x8x128xf32>
    %c0_19 = arith.constant 0 : index
    %c0_20 = arith.constant 0 : index
    %c0_21 = arith.constant 0 : index
    %c0_22 = arith.constant 0 : index
    %20 = vector.load %arg6[%c0_19, %c0_20, %c0_21, %c0_22] : memref<1x2x8x128xf32, #tpu.memory_space<vmem>>, vector<1x2x8x128xf32>
    tpu.vector_store %arg6[%c0_19, %c0_20, %c0_21, %c0_22], %19 {strides = array<i32>} : memref<1x2x8x128xf32, #tpu.memory_space<vmem>>, vector<1x2x8x128xf32>,
    return
  }
  func.func @transform_0(%arg0: i32, %arg1: i32) -> (i32, i32) {
    %c1_i32 = arith.constant 1 : i32
    %0 = arith.muli %arg0, %c1_i32 : i32
    %1 = arith.addi %0, %arg1 : i32
    %c0_i32 = arith.constant 0 : i32
    %2 = arith.minsi %1, %c0_i32 : i32
    %c0_i32_0 = arith.constant 0 : i32
    %c0_i32_1 = arith.constant 0 : i32
    return %2, %c0_i32_0 : i32, i32
  }
  func.func @transform_1(%arg0: i32, %arg1: i32) -> (i32, i32) {
    %c1_i32 = arith.constant 1 : i32
    %0 = arith.muli %arg0, %c1_i32 : i32
    %1 = arith.addi %0, %arg1 : i32
    %c0_i32 = arith.constant 0 : i32
    %2 = arith.minsi %1, %c0_i32 : i32
    %c0_i32_0 = arith.constant 0 : i32
    %c0_i32_1 = arith.constant 0 : i32
    return %2, %c0_i32_0 : i32, i32
  }
  func.func @transform_2(%arg0: i32, %arg1: i32) -> (i32, i32) {
    %c1_i32 = arith.constant 1 : i32
    %0 = arith.muli %arg0, %c1_i32 : i32
    %1 = arith.addi %0, %arg1 : i32
    %c0_i32 = arith.constant 0 : i32
    %2 = arith.minsi %1, %c0_i32 : i32
    %c0_i32_0 = arith.constant 0 : i32
    %c0_i32_1 = arith.constant 0 : i32
    return %2, %c0_i32_0 : i32, i32
  }
  func.func @transform_3(%arg0: i32, %arg1: i32) -> (i32, i32, i32, i32) {
    %c0_i32 = arith.constant 0 : i32
    %c0_i32_0 = arith.constant 0 : i32
    %c0_i32_1 = arith.constant 0 : i32
    %c0_i32_2 = arith.constant 0 : i32
    return %arg0, %c0_i32, %c0_i32_0, %c0_i32_1 : i32, i32, i32, i32
  }
  func.func @transform_4(%arg0: i32, %arg1: i32) -> (i32, i32, i32, i32) {
    %c0_i32 = arith.constant 0 : i32
    %c0_i32_0 = arith.constant 0 : i32
    %c0_i32_1 = arith.constant 0 : i32
    %c0_i32_2 = arith.constant 0 : i32
    return %arg0, %c0_i32, %c0_i32_0, %c0_i32_1 : i32, i32, i32, i32
  }
}

</mosaic_0001>

<bundles_post_ra>
// kernel: tpu_custom_call.1
= control target key start
LH: loop header
LB: loop body
LE: loop exit
PB: predicated region body
PF: predicated region fallthrough
CT: control target
= control target key end

     0   :  { %10 = vsyncpa [#allocation3], 0  ;;  %s343_s0 = inlined_call_operand.hbm [shape: f32[16,128], index: 0, kind: input, shape index: {}]   ;;  %s344_s1 = inlined_call_operand.hbm [shape: f32[16,128], index: 1, kind: input, shape index: {}]   ;;  %s345_s2 = inlined_call_operand.hbm [shape: f32[16,128], index: 2, kind: input, shape index: {}]   ;;  %s346_s3 = inlined_call_operand.hbm [shape: f32[1,2,8,128], index: 3, kind: output, shape index: {0}]   ;;  %s347_s4 = inlined_call_operand.hbm [shape: f32[1,2,8,128], index: 4, kind: output, shape index: {1}]  }
   0x1   :  { %11 = vsyncpa [#allocation6], 0 }
   0x2   :  { %12 = vsyncpa [#allocation4], 0 }
   0x3   :  { %13 = vsyncpa [#allocation10], 0  ;;  %s281_s15 = smov [#allocation5]   ;;  %s282_s17 = smov [#allocation2]  }
   0x4   :  { %s43_s16 = sshll.u32 %s281_s15, 4  ;;  %s25_s18 = sshll.u32 %s282_s17, 4  ;;  %s44_s16 = int_to_ptr.vmem [resolvable:$true] %s43_s16  ;;  %s26_s18 = int_to_ptr.vmem [resolvable:$true] %s25_s18 }
   0x5   :  { %s181_s19 = scalar_lea.vmem %s44_s16, 256  ;;  %p186_p1 = scmp.lt.s32.totalorder %s44_s16, %s44_s16 }
   0x6   :  { %p182_p0 = scmp.ne.s32.totalorder %s44_s16, %s181_s19  ;;  %p187_p2 = scmp.lt.s32.totalorder %s181_s19, %s181_s19 }
   0x8   :  { %p188_p3 = por %p187_p2, %p186_p1 }
   0xa   :  { %p189_p4 = pnand %p188_p3, %p182_p0 }
   0xc   :  { %192 = shalt.err (!%p189_p4)
}
   0xd   :  { %s283_s20 = smov 128   ;;  %s284_s21 = smov 8  }
   0xe   :  { %49 = dma.hbm_to_vmem [thread:$0]  %s344_s1, 256, %s44_s16, [#allocation6], %s283_s20, %s283_s20, %s284_s21  }
   0xf   :  { %s201_s24 = scalar_lea.vmem %s26_s18, 256  ;;  %p206_p6 = scmp.lt.s32.totalorder %s26_s18, %s26_s18 }
  0x10   :  { %p202_p5 = scmp.ne.s32.totalorder %s26_s18, %s201_s24  ;;  %p207_p7 = scmp.lt.s32.totalorder %s201_s24, %s201_s24 }
  0x12   :  { %p208_p8 = por %p207_p7, %p206_p6 }
  0x14   :  { %p209_p9 = pnand %p208_p8, %p202_p5 }
  0x16   :  { %212 = shalt.err (!%p209_p9)
}
  0x17   :  { %31 = dma.hbm_to_vmem [thread:$0]  %s343_s0, 256, %s26_s18, [#allocation3], %s283_s20, %s283_s20, %s284_s21  }
  0x18   :  { %s285_s27 = smov [#allocation7]  }
  0x19   :  { %s61_s28 = sshll.u32 %s285_s27, 4  ;;  %s62_s28 = int_to_ptr.vmem [resolvable:$true] %s61_s28 }
  0x1a   :  { %s221_s29 = scalar_lea.vmem %s62_s28, 256  ;;  %p226_p11 = scmp.lt.s32.totalorder %s62_s28, %s62_s28 }
  0x1b   :  { %p222_p10 = scmp.ne.s32.totalorder %s62_s28, %s221_s29  ;;  %p227_p12 = scmp.lt.s32.totalorder %s221_s29, %s221_s29 }
  0x1d   :  { %p228_p13 = por %p227_p12, %p226_p11 }
  0x1f   :  { %p229_p0 = pnand %p228_p13, %p222_p10 }
  0x21   :  { %232 = shalt.err (!%p229_p0)
}
  0x22   :  { %67 = dma.hbm_to_vmem [thread:$0]  %s345_s2, 256, %s62_s28, [#allocation6], %s283_s20, %s283_s20, %s284_s21  }
  0x23   :  { %273 = dma.done.wait [#allocation3], 256  }
  0x24   :  { %274 = vsyncadd [#allocation3], 4294967040 }
  0x25   :  { %275 = dma.done.wait [#allocation6], 512  }
  0x26   :  { %276 = vsyncadd [#allocation6], 4294966784  ;;  %s286_s0 = smov [#allocation9]   ;;  %v97_v0 = vld [vmem:[#allocation2] sm:$0xff]  ;;  %v99_v1 = vld [vmem:[#allocation5] sm:$0xff]  ;;  %s287_s2 = smov [#allocation8]  }
  0x27   :  { %s142_s5 = sshll.u32 %s286_s0, 4  ;;  %v101_v2 = vld [vmem:[#allocation7] sm:$0xff]  ;;  %v103_v3 = vsub.f32 %v97_v0, %v99_v1  ;;  %v98_v4 = vld [vmem:[#allocation2 + $0x8] sm:$0xff]  ;;  %v100_v5 = vld [vmem:[#allocation5 + $0x8] sm:$0xff]  ;;  %s130_s6 = sshll.u32 %s287_s2, 4  ;;  %s143_s5 = int_to_ptr.vmem [resolvable:$true] %s142_s5  ;;  %s131_s6 = int_to_ptr.vmem [resolvable:$true] %s130_s6 }
  0x28   :  { %v102_v6 = vld [vmem:[#allocation7 + $0x8] sm:$0xff]  ;;  %v104_v7 = vsub.f32 %v98_v4, %v100_v5  ;;  %123 = vst [vmem:[#allocation9] sm:$0xff] %v101_v2  ;;  %s233_s7 = scalar_lea.vmem %s143_s5, 256  ;;  %p238_p2 = scmp.lt.s32.totalorder %s143_s5, %s143_s5 }
  0x29   :  { %v105_v8 = vand.u32 2147483647, %v103_v3  ;;  %124 = vst [vmem:[#allocation9 + $0x8] sm:$0xff] %v102_v6  ;;  %p234_p1 = scmp.ne.s32.totalorder %s143_s5, %s233_s7  ;;  %p239_p3 = scmp.lt.s32.totalorder %s233_s7, %s233_s7 }
  0x2a   :  { %v106_v9 = vand.u32 2147483647, %v104_v7 }
  0x2b   :  { %v107_v10 = vmul.f32 %v105_v8, %v101_v2  ;;  %p240_p4 = por %p239_p3, %p238_p2 }
  0x2d   :  { %p241_p5 = pnand %p240_p4, %p234_p1 }
  0x2f   :  { %244 = shalt.err (!%p241_p5)
}
  0x30   :  { %148 = dma.vmem_to_hbm [thread:$0]  %s143_s5, 256, %s347_s4, [#allocation10], %s283_s20, %s283_s20, %s284_s21   ;;  %v108_v11 = vmul.f32 %v106_v9, %v102_v6  ;;  %115 = vst [vmem:[#allocation8] sm:$0xff] %v107_v10 }
  0x31   :  { %s253_s10 = scalar_lea.vmem %s131_s6, 256  ;;  %p258_p7 = scmp.lt.s32.totalorder %s131_s6, %s131_s6 }
  0x32   :  { %116 = vst [vmem:[#allocation8 + $0x8] sm:$0xff] %v108_v11  ;;  %p254_p6 = scmp.ne.s32.totalorder %s131_s6, %s253_s10  ;;  %p259_p8 = scmp.lt.s32.totalorder %s253_s10, %s253_s10 }
  0x34   :  { %p260_p9 = por %p259_p8, %p258_p7 }
  0x36   :  { %p261_p10 = pnand %p260_p9, %p254_p6 }
  0x38   :  { %264 = shalt.err (!%p261_p10)
}
  0x39   :  { %136 = dma.vmem_to_hbm [thread:$0]  %s131_s6, 256, %s346_s3, [#allocation4], %s283_s20, %s283_s20, %s284_s21  }
  0x3a   :  { %277 = dma.done.wait [#allocation4], 256  }
  0x3b   :  { %278 = vsyncadd [#allocation4], 4294967040 }
  0x3c   :  { %279 = dma.done.wait [#allocation10], 256  }
  0x3d   :  { %280 = vsyncadd [#allocation10], 4294967040 }
  0x3e   :  { %155 = vsyncpa [#allocation3], 1 }
  0x3f   :  { %156 = vsyncpa [#allocation6], 1 }
  0x40   :  { %157 = vsyncpa [#allocation4], 1 }
  0x41   :  { %158 = vsyncpa [#allocation10], 1 }

</bundles_post_ra>
